<compile_context>
chip_gen: v5e
topology: v5e:2x2
jax: 0.10.0
libtpu: 0.0.40
codegen_flags: <defaults>
</compile_context>

<pallas_src>
import functools
import math

import jax
import jax.numpy as jnp
from jax.experimental import pallas as pl
from jax.experimental.pallas import tpu as pltpu


def _bce_logits(x, y):
    # Numerically stable BCE-with-logits: max(x,0) - x*y + log1p(exp(-|x|)).
    return jnp.maximum(x, 0.0) - x * y + jnp.log1p(jnp.exp(-jnp.abs(x)))


def _slide_weight(y, aiou):
    # Piecewise slide weight, folded into a single exp:
    #   y <= aiou-0.1        -> 1
    #   aiou-0.1 < y < aiou  -> exp(1-aiou) == exp(1 - max(y, aiou))
    #   y >= aiou            -> exp(1-y)    == exp(1 - max(y, aiou))
    return jnp.where(y <= aiou - 0.1, 1.0, jnp.exp(1.0 - jnp.maximum(y, aiou)))


def _slide_sum_kernel(aiou_ref, pred_ref, true_ref, psum_ref, *, n, rt, lane, mask):
    """Per-tile partial sum of bce*w, written as a dense (8, lane) block."""
    x = pred_ref[...].astype(jnp.float32)
    y = true_ref[...].astype(jnp.float32)
    aiou = jnp.maximum(aiou_ref[0], 0.2)

    loss = _bce_logits(x, y) * _slide_weight(y, aiou)

    if mask:
        # Zero out the pad / ragged-tail elements (global flat index >= n).
        i = pl.program_id(0)
        row = jax.lax.broadcasted_iota(jnp.int32, (rt, lane), 0)
        col = jax.lax.broadcasted_iota(jnp.int32, (rt, lane), 1)
        gidx = (i * rt + row) * lane + col
        loss = jnp.where(gidx < n, loss, 0.0)

    # Reduce the (rt, lane) tile to (8, lane) along exact sublane-tile groups
    # (layout-friendly reshape, plain vreg adds).
    psum_ref[...] = loss.reshape(rt // 8, 8, lane).sum(axis=0)


def _slide_elem_kernel(aiou_ref, pred_ref, true_ref, out_ref):
    x = pred_ref[...].astype(jnp.float32)
    y = true_ref[...].astype(jnp.float32)
    aiou = jnp.maximum(aiou_ref[0], 0.2)
    out_ref[...] = (_bce_logits(x, y) * _slide_weight(y, aiou)).astype(out_ref.dtype)


def slide_loss(pred, true, auto_iou=0.5, reduction="mean", *, lane=512, row_tile=1024):
    """Fused SlideLoss(BCEWithLogitsLoss) forward.

    pred, true: same shape, any rank, any float dtype.
    auto_iou:   python float or scalar array (runtime value, no recompiles).
    reduction:  'mean' (default, matching BCEWithLogitsLoss), 'sum' or 'none'.
    """
    # TODO(synk): loss_fcn is assumed to be nn.BCEWithLogitsLoss (the standard
    # SlideLoss usage); an arbitrary loss_fcn callable cannot be fused generically.
    orig_shape = pred.shape
    n = int(math.prod(orig_shape)) if orig_shape else 1
    out_dtype = jnp.promote_types(pred.dtype, true.dtype)

    aiou = jnp.asarray(auto_iou, dtype=jnp.float32).reshape((1,))

    # Lane-dense layout: (rows, lane) with lane a large multiple of 128.
    # Pad only to a multiple of `lane` (rows rounded to a sublane multiple);
    # the pad / ragged last tile is masked in-kernel for the fused reduction.
    p = pred.reshape(-1)
    t = true.reshape(-1)
    rows = max(8, -(-n // lane))
    rows = -(-rows // 8) * 8
    padded = rows * lane
    if padded != n:
        p = jnp.pad(p, (0, padded - n))
        t = jnp.pad(t, (0, padded - n))
    p2 = p.reshape(rows, lane)
    t2 = t.reshape(rows, lane)

    # Row tile: big blocks (2 MiB/operand at f32), but keep >= ~8 grid steps
    # when the input is large enough so both v7x TensorCores get work.
    rt = min(row_tile, rows)
    while rt > 64 and -(-rows // rt) < 8:
        rt //= 2
    rt = max(8, (rt // 8) * 8)
    grid = -(-rows // rt)

    in_specs = [
        pl.BlockSpec(memory_space=pltpu.MemorySpace.SMEM),   # auto_iou scalar
        pl.BlockSpec((rt, lane), lambda i: (i, 0)),
        pl.BlockSpec((rt, lane), lambda i: (i, 0)),
    ]
    cparams = pltpu.CompilerParams(
        dimension_semantics=("parallel",),
        vmem_limit_bytes=48 * 1024 * 1024,          # safe on v7x (64 MiB/TC)
        allow_input_fusion=[False, True, True],     # fold pad/reshape into operands
    )

    if reduction in ("mean", "sum"):
        needs_mask = (padded != n) or (rows % rt != 0)
        psum = pl.pallas_call(
            functools.partial(_slide_sum_kernel, n=n, rt=rt, lane=lane, mask=needs_mask),
            out_shape=jax.ShapeDtypeStruct((grid * 8, lane), jnp.float32),
            grid=(grid,),
            in_specs=in_specs,
            out_specs=pl.BlockSpec((8, lane), lambda i: (i, 0)),
            compiler_params=cparams,
        )(aiou, p2, t2)
        total = jnp.sum(psum)
        if reduction == "mean":
            return total / n
        return total

    # reduction == 'none': full-size elementwise output in the input dtype.
    out2 = pl.pallas_call(
        _slide_elem_kernel,
        out_shape=jax.ShapeDtypeStruct((rows, lane), out_dtype),
        grid=(grid,),
        in_specs=in_specs,
        out_specs=pl.BlockSpec((rt, lane), lambda i: (i, 0)),
        compiler_params=cparams,
    )(aiou, p2, t2)
    return out2.reshape(-1)[:n].reshape(orig_shape)


def _reference(pred, true, auto_iou=0.5, reduction="mean"):
    auto_iou = max(float(auto_iou), 0.2)
    pred = pred.astype(jnp.float32)
    true = true.astype(jnp.float32)
    bce = jnp.maximum(pred, 0.0) - pred * true + jnp.log1p(jnp.exp(-jnp.abs(pred)))
    b1 = true <= auto_iou - 0.1
    b2 = (true > auto_iou - 0.1) & (true < auto_iou)
    b3 = true >= auto_iou
    w = 1.0 * b1 + math.exp(1.0 - auto_iou) * b2 + jnp.exp(1.0 - true) * b3
    loss = bce * w
    if reduction == "mean":
        return loss.mean()
    if reduction == "sum":
        return loss.sum()
    return loss


if __name__ == "__main__":
    key = jax.random.PRNGKey(0)
    k1, k2, k3, k4 = jax.random.split(key, 4)

    # Typical small YOLO-like cls-loss shape: (batch, anchors, classes).
    B, A, C = 2, 128, 16          # 4096 elements (no pad / no mask path)
    pred = jax.random.normal(k1, (B, A, C), dtype=jnp.float32) * 2.0
    true = jax.random.uniform(k2, (B, A, C), dtype=jnp.float32)

    # Elementwise ('none') check.
    loss_none = slide_loss(pred, true, auto_iou=0.5, reduction="none")
    jax.block_until_ready(loss_none)
    ref_none = _reference(pred, true, auto_iou=0.5, reduction="none")
    assert loss_none.shape == pred.shape
    assert jnp.allclose(loss_none, ref_none, atol=1e-5, rtol=1e-5)

    # Default module behavior: reduction='mean' with fused in-kernel partial
    # sums, including the auto_iou < 0.2 clamp path.
    loss_mean = slide_loss(pred, true, auto_iou=0.1, reduction="mean")
    jax.block_until_ready(loss_mean)
    ref_mean = _reference(pred, true, auto_iou=0.1, reduction="mean")
    assert jnp.allclose(loss_mean, ref_mean, atol=1e-5, rtol=1e-4)

    # Ragged size (1155 elements) exercises the in-kernel pad mask of the fused
    # reduction, plus the 'sum' reduction.
    pred_r = jax.random.normal(k3, (3, 77, 5), dtype=jnp.float32)
    true_r = jax.random.uniform(k4, (3, 77, 5), dtype=jnp.float32)
    loss_sum = slide_loss(pred_r, true_r, auto_iou=0.5, reduction="sum")
    jax.block_until_ready(loss_sum)
    ref_sum = _reference(pred_r, true_r, auto_iou=0.5, reduction="sum")
    assert jnp.allclose(loss_sum, ref_sum, atol=1e-4, rtol=1e-4)

    print("KERNEL_OK")
</pallas_src>

<mosaic_0001>
module attributes {stable_mosaic.version = 11 : i64} {
  func.func @_slide_elem_kernel(%arg0: i32, %arg1: memref<1xf32, #tpu.memory_space<smem>>, %arg2: memref<8x512xf32, #tpu.memory_space<vmem>>, %arg3: memref<8x512xf32, #tpu.memory_space<vmem>>, %arg4: memref<8x512xf32, #tpu.memory_space<vmem>>) attributes {dimension_semantics = [#tpu.dimension_semantics<parallel>], iteration_bounds = array<i64: 1>, scalar_prefetch = 0 : i64, scratch_operands = 0 : i64, tpu.core_type = #tpu.core_type<tc>, window_params = [{transform_indices = @transform_0, window_bounds = array<i64: 1>}, {transform_indices = @transform_1, window_bounds = array<i64: 8, 512>}, {transform_indices = @transform_2, window_bounds = array<i64: 8, 512>}, {transform_indices = @transform_3, window_bounds = array<i64: 8, 512>}]} {
    %c0 = arith.constant 0 : index
    %c0_0 = arith.constant 0 : index
    %0 = vector.load %arg2[%c0, %c0_0] : memref<8x512xf32, #tpu.memory_space<vmem>>, vector<8x512xf32>
    %c0_1 = arith.constant 0 : index
    %c0_2 = arith.constant 0 : index
    %1 = vector.load %arg3[%c0_1, %c0_2] : memref<8x512xf32, #tpu.memory_space<vmem>>, vector<8x512xf32>
    %c0_3 = arith.constant 0 : index
    %2 = memref.load %arg1[%c0_3] : memref<1xf32, #tpu.memory_space<smem>>
    %cst = arith.constant 2.000000e-01 : f32
    %3 = arith.maximumf %2, %cst : f32
    %cst_4 = arith.constant 0.000000e+00 : f32
    %4 = vector.broadcast %cst_4 : f32 to vector<8x512xf32>
    %5 = arith.maximumf %0, %4 : vector<8x512xf32>
    %6 = arith.mulf %0, %1 : vector<8x512xf32>
    %7 = arith.subf %5, %6 : vector<8x512xf32>
    %8 = math.absf %0 : vector<8x512xf32>
    %cst_5 = arith.constant 0.000000e+00 : f32
    %9 = vector.broadcast %cst_5 : f32 to vector<8x512xf32>
    %10 = arith.subf %9, %8 : vector<8x512xf32>
    %11 = math.exp %10 : vector<8x512xf32>
    %12 = math.log1p %11 : vector<8x512xf32>
    %13 = arith.addf %7, %12 : vector<8x512xf32>
    %cst_6 = arith.constant 1.000000e-01 : f32
    %14 = arith.subf %3, %cst_6 : f32
    %15 = vector.broadcast %14 : f32 to vector<8x512xf32>
    %16 = arith.cmpf ole, %1, %15 : vector<8x512xf32>
    %17 = vector.broadcast %3 : f32 to vector<8x512xf32>
    %18 = arith.maximumf %1, %17 : vector<8x512xf32>
    %cst_7 = arith.constant 1.000000e+00 : f32
    %19 = vector.broadcast %cst_7 : f32 to vector<8x512xf32>
    %20 = arith.subf %19, %18 : vector<8x512xf32>
    %21 = math.exp %20 : vector<8x512xf32>
    %cst_8 = arith.constant 1.000000e+00 : f32
    %22 = vector.broadcast %cst_8 : f32 to vector<8x512xf32>
    %23 = arith.select %16, %22, %21 : vector<8x512xi1>, vector<8x512xf32>
    %24 = arith.mulf %13, %23 : vector<8x512xf32>
    %c0_9 = arith.constant 0 : index
    %c0_10 = arith.constant 0 : index
    %25 = vector.load %arg4[%c0_9, %c0_10] : memref<8x512xf32, #tpu.memory_space<vmem>>, vector<8x512xf32>
    tpu.vector_store %arg4[%c0_9, %c0_10], %24 {strides = array<i32>} : memref<8x512xf32, #tpu.memory_space<vmem>>, vector<8x512xf32>,
    return
  }
  func.func @transform_0(%arg0: i32) -> i32 {
    %c0_i32 = arith.constant 0 : i32
    %c0_i32_0 = arith.constant 0 : i32
    return %c0_i32 : i32
  }
  func.func @transform_1(%arg0: i32) -> (i32, i32) {
    %c0_i32 = arith.constant 0 : i32
    %c0_i32_0 = arith.constant 0 : i32
    return %arg0, %c0_i32 : i32, i32
  }
  func.func @transform_2(%arg0: i32) -> (i32, i32) {
    %c0_i32 = arith.constant 0 : i32
    %c0_i32_0 = arith.constant 0 : i32
    return %arg0, %c0_i32 : i32, i32
  }
  func.func @transform_3(%arg0: i32) -> (i32, i32) {
    %c0_i32 = arith.constant 0 : i32
    %c0_i32_0 = arith.constant 0 : i32
    return %arg0, %c0_i32 : i32, i32
  }
}

</mosaic_0001>

<bundles_post_ra>
// kernel: tpu_custom_call.1
= control target key start
LH: loop header
LB: loop body
LE: loop exit
PB: predicated region body
PF: predicated region fallthrough
CT: control target
= control target key end

     0   :  { %9 = vsyncpa [#allocation4], 0  ;;  %s395_s0 = inlined_call_operand.<no memory space> [shape: f32[1], index: 0, kind: input, shape index: {}]   ;;  %s396_s1 = inlined_call_operand.hbm [shape: f32[8,512], index: 1, kind: input, shape index: {}]   ;;  %s397_s2 = inlined_call_operand.hbm [shape: f32[8,512], index: 2, kind: input, shape index: {}]   ;;  %s398_s3 = inlined_call_operand.hbm [shape: f32[8,512], index: 3, kind: output, shape index: {}]  }
   0x1   :  { %10 = vsyncpa [#allocation7], 0 }
   0x2   :  { %11 = vsyncpa [#allocation5], 0  ;;  %s19_s14 = sshll.u32 %s396_s1, 4  ;;  %s282_s15 = smov [#allocation3]   ;;  %s20_s14 = int_to_ptr.hbm [resolvable:$true] %s19_s14 }
   0x3   :  { %s21_s16 = sshll.u32 %s282_s15, 4  ;;  %s30_s19 = sshll.u32 %s397_s2, 4  ;;  %s22_s16 = int_to_ptr.vmem [resolvable:$true] %s21_s16  ;;  %s31_s19 = int_to_ptr.hbm [resolvable:$true] %s30_s19 }
   0x4   :  { %24 = dma.hbm_to_vmem [thread:$0]  %s20_s14, 512, %s22_s16, [#allocation4]  }
   0x5   :  { %s283_s20 = smov [#allocation6]  }
   0x6   :  { %s32_s21 = sshll.u32 %s283_s20, 4  ;;  %s33_s21 = int_to_ptr.vmem [resolvable:$true] %s32_s21 }
   0x7   :  { %35 = dma.hbm_to_vmem [thread:$0]  %s31_s19, 512, %s33_s21, [#allocation7]  }
   0x8   :  { %276 = dma.done.wait [#allocation4], 512  }
   0x9   :  { %277 = vsyncadd [#allocation4], 4294966784 }
   0xa   :  { %278 = dma.done.wait [#allocation7], 512  }
   0xb   :  { %279 = vsyncadd [#allocation7], 4294966784  ;;  %s284_s22 = smov 0.2   ;;  %v318_v1 = vld [vmem:[#allocation3] sm:$0xff]  ;;  %v322_v3 = vld [vmem:[#allocation3 + $0x8] sm:$0xff] }
   0xc   :  { %s315_s24 = smax.f32 %s284_s22, %s395_s0  ;;  %v320_v2 = vld [vmem:[#allocation6] sm:$0xff]  ;;  %v66_v4 = vand.u32 2147483647, %v318_v1  ;;  %v326_v6 = vld [vmem:[#allocation6 + $0x8] sm:$0xff]  ;;  %v67_v7 = vand.u32 2147483647, %v322_v3 }
   0xd   :  { %v128_v0 = vstv %s315_s24  ;;  %v329_v8 = vld [vmem:[#allocation3 + $0x10] sm:$0xff]  ;;  %v335_v17 = vld [vmem:[#allocation3 + $0x18] sm:$0xff]  ;;  %s175_s0 = sadd.f32 -0.1, %s315_s24  ;;  %v54_v30 = vmax.f32 %v318_v1, 0.0  ;;  %v58_v33 = vmul.f32 %v320_v2, %v318_v1  ;;  %v55_v39 = vmax.f32 %v322_v3, 0.0 }
   0xe   :  { %v129_v5 = vmax.f32 %v320_v2, %v128_v0  ;;  %v70_v9 = vsub.f32 0.0, %v66_v4  ;;  %v71_v10 = vsub.f32 0.0, %v67_v7  ;;  %v331_v11 = vld [vmem:[#allocation6 + $0x10] sm:$0xff]  ;;  %v130_v13 = vmax.f32 %v326_v6, %v128_v0  ;;  %v339_v20 = vld [vmem:[#allocation6 + $0x18] sm:$0xff]  ;;  %s285_s2 = smov [#allocation8]   ;;  %s164_s28 = sshll.u32 %s398_s3, 4  ;;  %s165_s28 = int_to_ptr.hbm [resolvable:$true] %s164_s28 }
   0xf   :  { %v68_v14 = vand.u32 2147483647, %v329_v8  ;;  %v131_v19 = vmax.f32 %v331_v11, %v128_v0  ;;  %v69_v23 = vand.u32 2147483647, %v335_v17  ;;  %v132_v27 = vmax.f32 %v339_v20, %v128_v0  ;;  %s162_s25 = sshll.u32 %s285_s2, 4  ;;  %s163_s25 = int_to_ptr.vmem [resolvable:$true] %s162_s25 }
  0x10   :  { %v74_v12 = vmul.f32 1.442695, %v70_v9  ;;  %v133_v15 = vsub.f32 1.0, %v129_v5  ;;  %v76_v16 = vmul.f32 1.442695, %v71_v10  ;;  %v134_v21 = vsub.f32 1.0, %v130_v13 }
  0x11   :  { %v72_v18 = vsub.f32 0.0, %v68_v14  ;;  %v135_v25 = vsub.f32 1.0, %v131_v19  ;;  %v73_v26 = vsub.f32 0.0, %v69_v23  ;;  %v343_v28 = vstv %s175_s0 }
  0x12   :  { %180 = vpow2.f32 %v74_v12  ;;  %v137_v24 = vmul.f32 1.442695, %v133_v15  ;;  %v139_v31 = vmul.f32 1.442695, %v134_v21  ;;  %vm124_vm0 = vcmp.le.f32.partialorder %v320_v2, %v343_v28 }
  0x13   :  { %182 = vpow2.f32 %v76_v16  ;;  %v78_v22 = vmul.f32 1.442695, %v72_v18  ;;  %v80_v32 = vmul.f32 1.442695, %v73_v26  ;;  %v141_v37 = vmul.f32 1.442695, %v135_v25 }
  0x14   :  { %v136_v38 = vsub.f32 1.0, %v132_v27  ;;  %v59_v40 = vmul.f32 %v326_v6, %v322_v3  ;;  %v56_v45 = vmax.f32 %v329_v8, 0.0  ;;  %v60_v50 = vmul.f32 %v331_v11, %v329_v8 }
  0x15   :  { %184 = vpow2.f32 %v78_v22  ;;  %v62_v53 = vsub.f32 %v54_v30, %v58_v33  ;;  %vm125_vm1 = vcmp.le.f32.partialorder %v326_v6, %v343_v28  ;;  %vm126_vm2 = vcmp.le.f32.partialorder %v331_v11, %v343_v28 }
  0x16   :  { %186 = vpow2.f32 %v137_v24  ;;  %v143_v51 = vmul.f32 1.442695, %v136_v38  ;;  %v63_v57 = vsub.f32 %v55_v39, %v59_v40  ;;  %v64_v4 = vsub.f32 %v56_v45, %v60_v50 }
  0x17   :  { %188 = vpow2.f32 %v80_v32  ;;  %v57_v9 = vmax.f32 %v335_v17, 0.0  ;;  %v61_v2 = vmul.f32 %v339_v20, %v335_v17  ;;  %vm127_vm6 = vcmp.le.f32.partialorder %v339_v20, %v343_v28 }
  0x18   :  { %v181_v29 = vpop.eup %180 }
  0x19   :  { %v82_v34 = vadd.f32 1.0, %v181_v29  ;;  %v85_v35 = vmul.f32 -0.5, %v181_v29  ;;  %v183_v36 = vpop.eup %182  ;;  %v88_v46 = vand.u32 2147483647, %v181_v29  ;;  %v65_v33 = vsub.f32 %v57_v9, %v61_v2 }
  0x1a   :  { %v91_v41 = vadd.f32 1.0, %v183_v36  ;;  %v94_v44 = vmul.f32 -0.5, %v183_v36  ;;  %v97_v54 = vand.u32 2147483647, %v183_v36 }
  0x1b   :  { %190 = vlog2.f32 %v82_v34  ;;  %v185_v42 = vpop.eup %184  ;;  %v86_v43 = vadd.f32 1.0, %v85_v35  ;;  %vm360_vm3 = vcmp.lt.f32.partialorder %v88_v46, 0.0004427343 }
  0x1c   :  { %192 = vpow2.f32 %v139_v31  ;;  %v100_v47 = vadd.f32 1.0, %v185_v42  ;;  %v103_v48 = vmul.f32 -0.5, %v185_v42  ;;  %v95_v49 = vadd.f32 1.0, %v94_v44  ;;  %v187_v52 = vpop.eup %186 }
  0x1d   :  { %194 = vlog2.f32 %v91_v41  ;;  %v189_v55 = vpop.eup %188  ;;  %v87_v56 = vmul.f32 %v181_v29, %v86_v43  ;;  %v106_v61 = vand.u32 2147483647, %v185_v42  ;;  %v145_v7 = vsel %vm124_vm0, 1.0, %v187_v52 }
  0x1e   :  { %196 = vpow2.f32 %v141_v37  ;;  %v104_v58 = vadd.f32 1.0, %v103_v48  ;;  %v109_v62 = vadd.f32 1.0, %v189_v55  ;;  %v112_v63 = vmul.f32 -0.5, %v189_v55 }
  0x1f   :  { %198 = vlog2.f32 %v100_v47  ;;  %v96_v3 = vmul.f32 %v183_v36, %v95_v49  ;;  %vm367_vm4 = vcmp.lt.f32.partialorder %v97_v54, 0.0004427343  ;;  %vm374_vm5 = vcmp.lt.f32.partialorder %v106_v61, 0.0004427343 }
  0x20   :  { %200 = vpow2.f32 %v143_v51  ;;  %v105_v14 = vmul.f32 %v185_v42, %v104_v58  ;;  %v113_v15 = vadd.f32 1.0, %v112_v63  ;;  %v115_v21 = vand.u32 2147483647, %v189_v55 }
  0x21   :  { %v191_v59 = vpop.eup %190  ;;  %202 = vlog2.f32 %v109_v62 }
  0x22   :  { %v193_v0 = vpop.eup %192  ;;  %v84_v1 = vmul.f32 0.6931472, %v191_v59  ;;  %v114_v17 = vmul.f32 %v189_v55, %v113_v15  ;;  %vm116_vm7 = vcmp.lt.f32.partialorder %v115_v21, 0.0004427343 }
  0x23   :  { %v195_v5 = vpop.eup %194  ;;  %v146_v23 = vsel %vm125_vm1, 1.0, %v193_v0 }
  0x24   :  { %v197_v10 = vpop.eup %196  ;;  %v90_v12 = vsel %vm360_vm3, %v87_v56, %v84_v1  ;;  %v93_v13 = vmul.f32 0.6931472, %v195_v5 }
  0x25   :  { %v199_v16 = vpop.eup %198  ;;  %v118_v18 = vadd.f32 %v90_v12, %v62_v53  ;;  %v147_v30 = vsel %vm126_vm2, 1.0, %v197_v10 }
  0x26   :  { %v99_v22 = vsel %vm367_vm4, %v96_v3, %v93_v13  ;;  %v102_v24 = vmul.f32 0.6931472, %v199_v16  ;;  %v201_v27 = vpop.eup %200 }
  0x27   :  { %v149_v25 = vmul.f32 %v145_v7, %v118_v18  ;;  %v119_v26 = vadd.f32 %v99_v22, %v63_v57  ;;  %v203_v31 = vpop.eup %202  ;;  %v148_v37 = vsel %vm127_vm6, 1.0, %v201_v27 }
  0x28   :  { %v108_v29 = vsel %vm374_vm5, %v105_v14, %v102_v24  ;;  %v111_v34 = vmul.f32 0.6931472, %v203_v31 }
  0x29   :  { %153 = vst [vmem:[#allocation8] sm:$0xff] %v149_v25  ;;  %v150_v32 = vmul.f32 %v146_v23, %v119_v26  ;;  %v120_v6 = vadd.f32 %v108_v29, %v64_v4 }
  0x2a   :  { %v117_v36 = vsel %vm116_vm7, %v114_v17, %v111_v34 }
  0x2b   :  { %154 = vst [vmem:[#allocation8 + $0x8] sm:$0xff] %v150_v32  ;;  %v151_v35 = vmul.f32 %v147_v30, %v120_v6  ;;  %v121_v11 = vadd.f32 %v117_v36, %v65_v33 }
  0x2d   :  { %155 = vst [vmem:[#allocation8 + $0x10] sm:$0xff] %v151_v35  ;;  %v152_v20 = vmul.f32 %v148_v37, %v121_v11 }
  0x2f   :  { %156 = vst [vmem:[#allocation8 + $0x18] sm:$0xff] %v152_v20 }
  0x30   :  { %167 = dma.vmem_to_hbm [thread:$0]  %s163_s25, 512, %s165_s28, [#allocation5]  }
  0x31   :  { %280 = dma.done.wait [#allocation5], 512  }
  0x32   :  { %281 = vsyncadd [#allocation5], 4294966784 }
  0x33   :  { %172 = vsyncpa [#allocation4], 1 }
  0x34   :  { %173 = vsyncpa [#allocation7], 1 }
  0x35   :  { %174 = vsyncpa [#allocation5], 1 }

</bundles_post_ra>
